<compile_context>
chip_gen: v6e
topology: v6e:2x2x1
jax: 0.10.0
libtpu: 0.0.40
codegen_flags: <defaults>
</compile_context>

<pallas_src>
import functools
import numpy as np
import jax
import jax.numpy as jnp
from jax.experimental import pallas as pl
from jax.experimental.pallas import tpu as pltpu


# ----------------------------- schedule (plain numpy, matches torch code) ---
def make_beta_schedule_linear(n_timestep, linear_start=1e-4, linear_end=2e-2):
    return np.linspace(linear_start, linear_end, n_timestep, dtype=np.float64)


# ----------------------------- Pallas kernel --------------------------------
def _p_losses_kernel(a_ref,      # SMEM (B,)   continuous_sqrt_alpha_cumprod
                     s_ref,      # SMEM (B,)   sqrt(1 - a^2), precomputed
                     wsr_ref,    # SMEM (C*C,) denoiser weights on SR half
                     wns_ref,    # SMEM (C*C,) denoiser weights on noisy half
                     bias_ref,   # SMEM (C,)   denoiser bias
                     nw_ref,     # SMEM (C,)   noise-level embedding
                     x_hr_ref,   # VMEM (1, C, S, 128) bf16/f32 tile
                     x_sr_ref,   # VMEM (1, C, S, 128)
                     noise_ref,  # VMEM (1, C, S, 128)
                     loss_ref,   # VMEM (1, 1, 1, 128) lane-partial L1 sums
                     *, C):
    b = pl.program_id(0)
    a = a_ref[b]                      # per-batch scalars from SMEM
    s = s_ref[b]
    S = x_hr_ref.shape[2]             # sublanes in this tile (static)

    # x_recon accumulators: one sublane/lane-dense (S,128) f32 slab per output
    # channel, seeded with the scalar conditioning term bias[co] + nw[co]*a.
    rec = [jnp.full((S, 128), bias_ref[co] + nw_ref[co] * a, jnp.float32)
           for co in range(C)]

    # q_sample folded into the 1x1 conv:
    #   x_noisy[ci] = a*x_hr[ci] + s*noise[ci]
    #   rec[co]    += wsr[co,ci]*x_sr[ci] + (wns[co,ci]*a)*x_hr[ci]
    #                                     + (wns[co,ci]*s)*noise[ci]
    # Outer loop over ci: each input slab is loaded/upcast exactly once; only
    # the C accumulators stay live across iterations (bounded vreg pressure).
    for ci in range(C):
        xsr = x_sr_ref[0, ci].astype(jnp.float32)
        for co in range(C):
            rec[co] = rec[co] + wsr_ref[co * C + ci] * xsr
        xhr = x_hr_ref[0, ci].astype(jnp.float32)
        for co in range(C):
            rec[co] = rec[co] + (wns_ref[co * C + ci] * a) * xhr
        nsi = noise_ref[0, ci].astype(jnp.float32)
        for co in range(C):
            rec[co] = rec[co] + (wns_ref[co * C + ci] * s) * nsi

    # L1Loss(reduction='sum'): vector accumulator on the VPU, one sublane
    # reduction per tile, lane partials written out (wrapper sums them).
    acc = jnp.zeros((S, 128), jnp.float32)
    for co in range(C):
        acc = acc + jnp.abs(noise_ref[0, co].astype(jnp.float32) - rec[co])
    loss_ref[...] = jnp.sum(acc, axis=0, keepdims=True).reshape(1, 1, 1, 128)


def _pick_tile_rows(rows, max_rows=64):
    """Choose the sublane extent of a spatial tile (rows of 128 lanes)."""
    if rows <= max_rows:
        return rows                      # single tile = full spatial axis
    for d in range(max_rows, 7, -1):     # largest divisor that is a multiple of 8
        if rows % d == 0 and d % 8 == 0:
            return d
    return rows                          # fallback: full axis (always legal)


def gaussian_diffusion_p_losses(x_hr, x_sr, noise, sqrt_alpha, w, bias, nw):
    """Pallas forward pass of GaussianDiffusion.p_losses:
         x_noisy = a*x_HR + sqrt(1-a^2)*noise                (q_sample)
         x_recon = denoise_fn(cat([x_SR, x_noisy], ch), a)   (1x1-conv mixer)
         loss    = L1Loss(reduction='sum')(noise, x_recon)
       x_hr/x_sr/noise: (B, C, HW) float32 or bfloat16 (bf16 halves HBM bytes
       of this memory-bound kernel); sqrt_alpha: (B,); w: (C, 2C); bias/nw:
       (C,). Returns scalar f32 loss."""
    B, C, HW = x_hr.shape
    assert HW % 128 == 0, "spatial size must be a multiple of 128 lanes"
    rows = HW // 128
    S = _pick_tile_rows(rows)
    num_tiles = rows // S

    # Transpose-free, lane-dense layout: split the trailing dim only (free).
    def as_tiles(x):
        return x.reshape(B, C, rows, 128)

    x_hr_t, x_sr_t, noise_t = as_tiles(x_hr), as_tiles(x_sr), as_tiles(noise)

    a = sqrt_alpha.astype(jnp.float32)
    s = jnp.sqrt(1.0 - a * a)            # keep sqrt out of the kernel
    w = w.astype(jnp.float32)
    w_sr = w[:, :C].reshape(-1)          # split once in the wrapper
    w_ns = w[:, C:].reshape(-1)
    bias = bias.astype(jnp.float32).reshape(-1)
    nw = nw.astype(jnp.float32).reshape(-1)

    smem = pl.BlockSpec(memory_space=pltpu.MemorySpace.SMEM)
    big_spec = pl.BlockSpec((1, C, S, 128), lambda b, t: (b, 0, t, 0))
    out_spec = pl.BlockSpec((1, 1, 1, 128), lambda b, t: (b, t, 0, 0))

    in_bytes = jnp.dtype(x_hr_t.dtype).itemsize
    block_bytes = C * S * 128 * in_bytes
    # 3 inputs x 2 pipeline buffers + output block + headroom for f32 slabs.
    vmem_bytes = 2 * (3 * block_bytes + 128 * 4) + 8 * S * 128 * 4
    vmem_limit = int(min(max(4 * vmem_bytes, 4 << 20), 32 << 20))

    flops = B * HW * (6 * C * C + 4 * C)
    bytes_accessed = 3 * B * C * HW * in_bytes + B * num_tiles * 128 * 4

    kernel = functools.partial(_p_losses_kernel, C=C)
    partials = pl.pallas_call(
        kernel,
        grid=(B, num_tiles),
        out_shape=jax.ShapeDtypeStruct((B, num_tiles, 1, 128), jnp.float32),
        in_specs=[smem, smem, smem, smem, smem, smem,
                  big_spec, big_spec, big_spec],
        out_specs=out_spec,
        compiler_params=pltpu.CompilerParams(
            dimension_semantics=("parallel", "parallel"),
            vmem_limit_bytes=vmem_limit),
        cost_estimate=pl.CostEstimate(flops=flops, transcendentals=0,
                                      bytes_accessed=bytes_accessed),
    )(a, s, w_sr, w_ns, bias, nw, x_hr_t, x_sr_t, noise_t)
    # TODO(synk): if the real denoise_fn channel mix has C >= ~32, switch the
    # in-kernel unroll to jnp.dot(..., preferred_element_type=f32) on the MXU;
    # on v6e/v7x the mix itself could also stay bf16 with an f32 accumulator.
    return jnp.sum(partials)


# ----------------------------- pure-JAX reference ----------------------------
def ref_p_losses(x_hr, x_sr, noise, sqrt_alpha, w, bias, nw):
    a = sqrt_alpha[:, None, None]
    x_noisy = a * x_hr + jnp.sqrt(1.0 - a * a) * noise
    inp = jnp.concatenate([x_sr, x_noisy], axis=1)                 # (B, 2C, HW)
    x_recon = (jnp.einsum('co,boh->bch', w, inp,
                          precision=jax.lax.Precision.HIGHEST)
               + bias[None, :, None] + nw[None, :, None] * a)
    return jnp.sum(jnp.abs(noise - x_recon))


if __name__ == "__main__":
    # --- module config (defaults from GaussianDiffusion) ---
    B, C, IMG = 2, 3, 16
    HW = IMG * IMG
    n_timestep = 100

    # noise schedule (set_new_noise_schedule, 'linear')
    betas = make_beta_schedule_linear(n_timestep)
    alphas_cumprod = np.cumprod(1.0 - betas)
    sqrt_alphas_cumprod_prev = np.sqrt(np.append(1.0, alphas_cumprod))

    key = jax.random.PRNGKey(0)
    k_hr, k_sr, k_noise, k_t, k_cont, k_w, k_b, k_nw = jax.random.split(key, 8)

    # inputs (PyTorch NCHW), flattened to (B, C, H*W)
    x_hr = jax.random.normal(k_hr, (B, C, IMG, IMG), jnp.float32).reshape(B, C, HW)
    x_sr = jax.random.normal(k_sr, (B, C, IMG, IMG), jnp.float32).reshape(B, C, HW)
    noise = jax.random.normal(k_noise, (B, C, IMG, IMG), jnp.float32).reshape(B, C, HW)

    # t ~ randint(1, num_timesteps+1); continuous_sqrt_alpha_cumprod per batch
    t = int(jax.random.randint(k_t, (), 1, n_timestep + 1))
    lo = float(sqrt_alphas_cumprod_prev[t - 1])
    hi = float(sqrt_alphas_cumprod_prev[t])
    sqrt_alpha = jax.random.uniform(k_cont, (B,), jnp.float32, minval=lo, maxval=hi)

    # TODO(synk): the real denoise_fn is an external UNet; represented here by a
    # deterministic 1x1-conv channel mixer with noise-level conditioning.
    w = 0.1 * jax.random.normal(k_w, (C, 2 * C), jnp.float32)
    bias = 0.05 * jax.random.normal(k_b, (C,), jnp.float32)
    nw = 0.05 * jax.random.normal(k_nw, (C,), jnp.float32)

    # Stream the three large tensors as bf16 (halves HBM traffic); all kernel
    # math stays f32, so the reference is computed on the same rounded inputs.
    x_hr_bf = x_hr.astype(jnp.bfloat16)
    x_sr_bf = x_sr.astype(jnp.bfloat16)
    noise_bf = noise.astype(jnp.bfloat16)

    loss = gaussian_diffusion_p_losses(x_hr_bf, x_sr_bf, noise_bf,
                                       sqrt_alpha, w, bias, nw)
    loss = jax.block_until_ready(loss)

    loss_ref = ref_p_losses(x_hr_bf.astype(jnp.float32),
                            x_sr_bf.astype(jnp.float32),
                            noise_bf.astype(jnp.float32),
                            sqrt_alpha, w, bias, nw)
    np.testing.assert_allclose(np.asarray(loss), np.asarray(loss_ref),
                               rtol=1e-4, atol=1e-3)
    print("KERNEL_OK")
</pallas_src>

<mosaic_0001>
module attributes {stable_mosaic.version = 11 : i64} {
  func.func @_p_losses_kernel(%arg0: i32, %arg1: i32, %arg2: memref<2xf32, #tpu.memory_space<smem>>, %arg3: memref<2xf32, #tpu.memory_space<smem>>, %arg4: memref<9xf32, #tpu.memory_space<smem>>, %arg5: memref<9xf32, #tpu.memory_space<smem>>, %arg6: memref<3xf32, #tpu.memory_space<smem>>, %arg7: memref<3xf32, #tpu.memory_space<smem>>, %arg8: memref<1x3x2x128xbf16, #tpu.memory_space<vmem>>, %arg9: memref<1x3x2x128xbf16, #tpu.memory_space<vmem>>, %arg10: memref<1x3x2x128xbf16, #tpu.memory_space<vmem>>, %arg11: memref<1x1x1x128xf32, #tpu.memory_space<vmem>>) attributes {dimension_semantics = [#tpu.dimension_semantics<parallel>, #tpu.dimension_semantics<parallel>], iteration_bounds = array<i64: 2, 1>, scalar_prefetch = 0 : i64, scratch_operands = 0 : i64, tpu.core_type = #tpu.core_type<tc>, window_params = [{transform_indices = @transform_0, window_bounds = array<i64: 2>}, {transform_indices = @transform_1, window_bounds = array<i64: 2>}, {transform_indices = @transform_2, window_bounds = array<i64: 9>}, {transform_indices = @transform_3, window_bounds = array<i64: 9>}, {transform_indices = @transform_4, window_bounds = array<i64: 3>}, {transform_indices = @transform_5, window_bounds = array<i64: 3>}, {transform_indices = @transform_6, window_bounds = array<i64: 1, 3, 2, 128>}, {transform_indices = @transform_7, window_bounds = array<i64: 1, 3, 2, 128>}, {transform_indices = @transform_8, window_bounds = array<i64: 1, 3, 2, 128>}, {transform_indices = @transform_9, window_bounds = array<i64: 1, 1, 1, 128>}]} {
    %0 = arith.index_cast %arg0 : i32 to index
    %1 = memref.load %arg2[%0] : memref<2xf32, #tpu.memory_space<smem>>
    %2 = arith.index_cast %arg0 : i32 to index
    %3 = memref.load %arg3[%2] : memref<2xf32, #tpu.memory_space<smem>>
    %c0 = arith.constant 0 : index
    %4 = memref.load %arg6[%c0] : memref<3xf32, #tpu.memory_space<smem>>
    %c0_0 = arith.constant 0 : index
    %5 = memref.load %arg7[%c0_0] : memref<3xf32, #tpu.memory_space<smem>>
    %6 = arith.mulf %5, %1 : f32
    %7 = arith.addf %4, %6 : f32
    %8 = vector.broadcast %7 : f32 to vector<2x128xf32>
    %c1 = arith.constant 1 : index
    %9 = memref.load %arg6[%c1] : memref<3xf32, #tpu.memory_space<smem>>
    %c1_1 = arith.constant 1 : index
    %10 = memref.load %arg7[%c1_1] : memref<3xf32, #tpu.memory_space<smem>>
    %11 = arith.mulf %10, %1 : f32
    %12 = arith.addf %9, %11 : f32
    %13 = vector.broadcast %12 : f32 to vector<2x128xf32>
    %c2 = arith.constant 2 : index
    %14 = memref.load %arg6[%c2] : memref<3xf32, #tpu.memory_space<smem>>
    %c2_2 = arith.constant 2 : index
    %15 = memref.load %arg7[%c2_2] : memref<3xf32, #tpu.memory_space<smem>>
    %16 = arith.mulf %15, %1 : f32
    %17 = arith.addf %14, %16 : f32
    %18 = vector.broadcast %17 : f32 to vector<2x128xf32>
    %c0_3 = arith.constant 0 : index
    %c0_4 = arith.constant 0 : index
    %c0_5 = arith.constant 0 : index
    %c0_6 = arith.constant 0 : index
    %19 = vector.load %arg9[%c0_3, %c0_4, %c0_5, %c0_6] : memref<1x3x2x128xbf16, #tpu.memory_space<vmem>>, vector<1x1x2x128xbf16>
    %20 = vector.shape_cast %19 : vector<1x1x2x128xbf16> to vector<2x128xbf16>
    %21 = arith.extf %20 : vector<2x128xbf16> to vector<2x128xf32>
    %c0_7 = arith.constant 0 : index
    %22 = memref.load %arg4[%c0_7] : memref<9xf32, #tpu.memory_space<smem>>
    %23 = vector.broadcast %22 : f32 to vector<2x128xf32>
    %24 = arith.mulf %23, %21 : vector<2x128xf32>
    %25 = arith.addf %8, %24 : vector<2x128xf32>
    %c3 = arith.constant 3 : index
    %26 = memref.load %arg4[%c3] : memref<9xf32, #tpu.memory_space<smem>>
    %27 = vector.broadcast %26 : f32 to vector<2x128xf32>
    %28 = arith.mulf %27, %21 : vector<2x128xf32>
    %29 = arith.addf %13, %28 : vector<2x128xf32>
    %c6 = arith.constant 6 : index
    %30 = memref.load %arg4[%c6] : memref<9xf32, #tpu.memory_space<smem>>
    %31 = vector.broadcast %30 : f32 to vector<2x128xf32>
    %32 = arith.mulf %31, %21 : vector<2x128xf32>
    %33 = arith.addf %18, %32 : vector<2x128xf32>
    %c0_8 = arith.constant 0 : index
    %c0_9 = arith.constant 0 : index
    %c0_10 = arith.constant 0 : index
    %c0_11 = arith.constant 0 : index
    %34 = vector.load %arg8[%c0_8, %c0_9, %c0_10, %c0_11] : memref<1x3x2x128xbf16, #tpu.memory_space<vmem>>, vector<1x1x2x128xbf16>
    %35 = vector.shape_cast %34 : vector<1x1x2x128xbf16> to vector<2x128xbf16>
    %36 = arith.extf %35 : vector<2x128xbf16> to vector<2x128xf32>
    %c0_12 = arith.constant 0 : index
    %37 = memref.load %arg5[%c0_12] : memref<9xf32, #tpu.memory_space<smem>>
    %38 = arith.mulf %37, %1 : f32
    %39 = vector.broadcast %38 : f32 to vector<2x128xf32>
    %40 = arith.mulf %39, %36 : vector<2x128xf32>
    %41 = arith.addf %25, %40 : vector<2x128xf32>
    %c3_13 = arith.constant 3 : index
    %42 = memref.load %arg5[%c3_13] : memref<9xf32, #tpu.memory_space<smem>>
    %43 = arith.mulf %42, %1 : f32
    %44 = vector.broadcast %43 : f32 to vector<2x128xf32>
    %45 = arith.mulf %44, %36 : vector<2x128xf32>
    %46 = arith.addf %29, %45 : vector<2x128xf32>
    %c6_14 = arith.constant 6 : index
    %47 = memref.load %arg5[%c6_14] : memref<9xf32, #tpu.memory_space<smem>>
    %48 = arith.mulf %47, %1 : f32
    %49 = vector.broadcast %48 : f32 to vector<2x128xf32>
    %50 = arith.mulf %49, %36 : vector<2x128xf32>
    %51 = arith.addf %33, %50 : vector<2x128xf32>
    %c0_15 = arith.constant 0 : index
    %c0_16 = arith.constant 0 : index
    %c0_17 = arith.constant 0 : index
    %c0_18 = arith.constant 0 : index
    %52 = vector.load %arg10[%c0_15, %c0_16, %c0_17, %c0_18] : memref<1x3x2x128xbf16, #tpu.memory_space<vmem>>, vector<1x1x2x128xbf16>
    %53 = vector.shape_cast %52 : vector<1x1x2x128xbf16> to vector<2x128xbf16>
    %54 = arith.extf %53 : vector<2x128xbf16> to vector<2x128xf32>
    %c0_19 = arith.constant 0 : index
    %55 = memref.load %arg5[%c0_19] : memref<9xf32, #tpu.memory_space<smem>>
    %56 = arith.mulf %55, %3 : f32
    %57 = vector.broadcast %56 : f32 to vector<2x128xf32>
    %58 = arith.mulf %57, %54 : vector<2x128xf32>
    %59 = arith.addf %41, %58 : vector<2x128xf32>
    %c3_20 = arith.constant 3 : index
    %60 = memref.load %arg5[%c3_20] : memref<9xf32, #tpu.memory_space<smem>>
    %61 = arith.mulf %60, %3 : f32
    %62 = vector.broadcast %61 : f32 to vector<2x128xf32>
    %63 = arith.mulf %62, %54 : vector<2x128xf32>
    %64 = arith.addf %46, %63 : vector<2x128xf32>
    %c6_21 = arith.constant 6 : index
    %65 = memref.load %arg5[%c6_21] : memref<9xf32, #tpu.memory_space<smem>>
    %66 = arith.mulf %65, %3 : f32
    %67 = vector.broadcast %66 : f32 to vector<2x128xf32>
    %68 = arith.mulf %67, %54 : vector<2x128xf32>
    %69 = arith.addf %51, %68 : vector<2x128xf32>
    %c0_22 = arith.constant 0 : index
    %c1_23 = arith.constant 1 : index
    %c0_24 = arith.constant 0 : index
    %c0_25 = arith.constant 0 : index
    %70 = vector.load %arg9[%c0_22, %c1_23, %c0_24, %c0_25] : memref<1x3x2x128xbf16, #tpu.memory_space<vmem>>, vector<1x1x2x128xbf16>
    %71 = vector.shape_cast %70 : vector<1x1x2x128xbf16> to vector<2x128xbf16>
    %72 = arith.extf %71 : vector<2x128xbf16> to vector<2x128xf32>
    %c1_26 = arith.constant 1 : index
    %73 = memref.load %arg4[%c1_26] : memref<9xf32, #tpu.memory_space<smem>>
    %74 = vector.broadcast %73 : f32 to vector<2x128xf32>
    %75 = arith.mulf %74, %72 : vector<2x128xf32>
    %76 = arith.addf %59, %75 : vector<2x128xf32>
    %c4 = arith.constant 4 : index
    %77 = memref.load %arg4[%c4] : memref<9xf32, #tpu.memory_space<smem>>
    %78 = vector.broadcast %77 : f32 to vector<2x128xf32>
    %79 = arith.mulf %78, %72 : vector<2x128xf32>
    %80 = arith.addf %64, %79 : vector<2x128xf32>
    %c7 = arith.constant 7 : index
    %81 = memref.load %arg4[%c7] : memref<9xf32, #tpu.memory_space<smem>>
    %82 = vector.broadcast %81 : f32 to vector<2x128xf32>
    %83 = arith.mulf %82, %72 : vector<2x128xf32>
    %84 = arith.addf %69, %83 : vector<2x128xf32>
    %c0_27 = arith.constant 0 : index
    %c1_28 = arith.constant 1 : index
    %c0_29 = arith.constant 0 : index
    %c0_30 = arith.constant 0 : index
    %85 = vector.load %arg8[%c0_27, %c1_28, %c0_29, %c0_30] : memref<1x3x2x128xbf16, #tpu.memory_space<vmem>>, vector<1x1x2x128xbf16>
    %86 = vector.shape_cast %85 : vector<1x1x2x128xbf16> to vector<2x128xbf16>
    %87 = arith.extf %86 : vector<2x128xbf16> to vector<2x128xf32>
    %c1_31 = arith.constant 1 : index
    %88 = memref.load %arg5[%c1_31] : memref<9xf32, #tpu.memory_space<smem>>
    %89 = arith.mulf %88, %1 : f32
    %90 = vector.broadcast %89 : f32 to vector<2x128xf32>
    %91 = arith.mulf %90, %87 : vector<2x128xf32>
    %92 = arith.addf %76, %91 : vector<2x128xf32>
    %c4_32 = arith.constant 4 : index
    %93 = memref.load %arg5[%c4_32] : memref<9xf32, #tpu.memory_space<smem>>
    %94 = arith.mulf %93, %1 : f32
    %95 = vector.broadcast %94 : f32 to vector<2x128xf32>
    %96 = arith.mulf %95, %87 : vector<2x128xf32>
    %97 = arith.addf %80, %96 : vector<2x128xf32>
    %c7_33 = arith.constant 7 : index
    %98 = memref.load %arg5[%c7_33] : memref<9xf32, #tpu.memory_space<smem>>
    %99 = arith.mulf %98, %1 : f32
    %100 = vector.broadcast %99 : f32 to vector<2x128xf32>
    %101 = arith.mulf %100, %87 : vector<2x128xf32>
    %102 = arith.addf %84, %101 : vector<2x128xf32>
    %c0_34 = arith.constant 0 : index
    %c1_35 = arith.constant 1 : index
    %c0_36 = arith.constant 0 : index
    %c0_37 = arith.constant 0 : index
    %103 = vector.load %arg10[%c0_34, %c1_35, %c0_36, %c0_37] : memref<1x3x2x128xbf16, #tpu.memory_space<vmem>>, vector<1x1x2x128xbf16>
    %104 = vector.shape_cast %103 : vector<1x1x2x128xbf16> to vector<2x128xbf16>
    %105 = arith.extf %104 : vector<2x128xbf16> to vector<2x128xf32>
    %c1_38 = arith.constant 1 : index
    %106 = memref.load %arg5[%c1_38] : memref<9xf32, #tpu.memory_space<smem>>
    %107 = arith.mulf %106, %3 : f32
    %108 = vector.broadcast %107 : f32 to vector<2x128xf32>
    %109 = arith.mulf %108, %105 : vector<2x128xf32>
    %110 = arith.addf %92, %109 : vector<2x128xf32>
    %c4_39 = arith.constant 4 : index
    %111 = memref.load %arg5[%c4_39] : memref<9xf32, #tpu.memory_space<smem>>
    %112 = arith.mulf %111, %3 : f32
    %113 = vector.broadcast %112 : f32 to vector<2x128xf32>
    %114 = arith.mulf %113, %105 : vector<2x128xf32>
    %115 = arith.addf %97, %114 : vector<2x128xf32>
    %c7_40 = arith.constant 7 : index
    %116 = memref.load %arg5[%c7_40] : memref<9xf32, #tpu.memory_space<smem>>
    %117 = arith.mulf %116, %3 : f32
    %118 = vector.broadcast %117 : f32 to vector<2x128xf32>
    %119 = arith.mulf %118, %105 : vector<2x128xf32>
    %120 = arith.addf %102, %119 : vector<2x128xf32>
    %c0_41 = arith.constant 0 : index
    %c2_42 = arith.constant 2 : index
    %c0_43 = arith.constant 0 : index
    %c0_44 = arith.constant 0 : index
    %121 = vector.load %arg9[%c0_41, %c2_42, %c0_43, %c0_44] : memref<1x3x2x128xbf16, #tpu.memory_space<vmem>>, vector<1x1x2x128xbf16>
    %122 = vector.shape_cast %121 : vector<1x1x2x128xbf16> to vector<2x128xbf16>
    %123 = arith.extf %122 : vector<2x128xbf16> to vector<2x128xf32>
    %c2_45 = arith.constant 2 : index
    %124 = memref.load %arg4[%c2_45] : memref<9xf32, #tpu.memory_space<smem>>
    %125 = vector.broadcast %124 : f32 to vector<2x128xf32>
    %126 = arith.mulf %125, %123 : vector<2x128xf32>
    %127 = arith.addf %110, %126 : vector<2x128xf32>
    %c5 = arith.constant 5 : index
    %128 = memref.load %arg4[%c5] : memref<9xf32, #tpu.memory_space<smem>>
    %129 = vector.broadcast %128 : f32 to vector<2x128xf32>
    %130 = arith.mulf %129, %123 : vector<2x128xf32>
    %131 = arith.addf %115, %130 : vector<2x128xf32>
    %c8 = arith.constant 8 : index
    %132 = memref.load %arg4[%c8] : memref<9xf32, #tpu.memory_space<smem>>
    %133 = vector.broadcast %132 : f32 to vector<2x128xf32>
    %134 = arith.mulf %133, %123 : vector<2x128xf32>
    %135 = arith.addf %120, %134 : vector<2x128xf32>
    %c0_46 = arith.constant 0 : index
    %c2_47 = arith.constant 2 : index
    %c0_48 = arith.constant 0 : index
    %c0_49 = arith.constant 0 : index
    %136 = vector.load %arg8[%c0_46, %c2_47, %c0_48, %c0_49] : memref<1x3x2x128xbf16, #tpu.memory_space<vmem>>, vector<1x1x2x128xbf16>
    %137 = vector.shape_cast %136 : vector<1x1x2x128xbf16> to vector<2x128xbf16>
    %138 = arith.extf %137 : vector<2x128xbf16> to vector<2x128xf32>
    %c2_50 = arith.constant 2 : index
    %139 = memref.load %arg5[%c2_50] : memref<9xf32, #tpu.memory_space<smem>>
    %140 = arith.mulf %139, %1 : f32
    %141 = vector.broadcast %140 : f32 to vector<2x128xf32>
    %142 = arith.mulf %141, %138 : vector<2x128xf32>
    %143 = arith.addf %127, %142 : vector<2x128xf32>
    %c5_51 = arith.constant 5 : index
    %144 = memref.load %arg5[%c5_51] : memref<9xf32, #tpu.memory_space<smem>>
    %145 = arith.mulf %144, %1 : f32
    %146 = vector.broadcast %145 : f32 to vector<2x128xf32>
    %147 = arith.mulf %146, %138 : vector<2x128xf32>
    %148 = arith.addf %131, %147 : vector<2x128xf32>
    %c8_52 = arith.constant 8 : index
    %149 = memref.load %arg5[%c8_52] : memref<9xf32, #tpu.memory_space<smem>>
    %150 = arith.mulf %149, %1 : f32
    %151 = vector.broadcast %150 : f32 to vector<2x128xf32>
    %152 = arith.mulf %151, %138 : vector<2x128xf32>
    %153 = arith.addf %135, %152 : vector<2x128xf32>
    %c0_53 = arith.constant 0 : index
    %c2_54 = arith.constant 2 : index
    %c0_55 = arith.constant 0 : index
    %c0_56 = arith.constant 0 : index
    %154 = vector.load %arg10[%c0_53, %c2_54, %c0_55, %c0_56] : memref<1x3x2x128xbf16, #tpu.memory_space<vmem>>, vector<1x1x2x128xbf16>
    %155 = vector.shape_cast %154 : vector<1x1x2x128xbf16> to vector<2x128xbf16>
    %156 = arith.extf %155 : vector<2x128xbf16> to vector<2x128xf32>
    %c2_57 = arith.constant 2 : index
    %157 = memref.load %arg5[%c2_57] : memref<9xf32, #tpu.memory_space<smem>>
    %158 = arith.mulf %157, %3 : f32
    %159 = vector.broadcast %158 : f32 to vector<2x128xf32>
    %160 = arith.mulf %159, %156 : vector<2x128xf32>
    %161 = arith.addf %143, %160 : vector<2x128xf32>
    %c5_58 = arith.constant 5 : index
    %162 = memref.load %arg5[%c5_58] : memref<9xf32, #tpu.memory_space<smem>>
    %163 = arith.mulf %162, %3 : f32
    %164 = vector.broadcast %163 : f32 to vector<2x128xf32>
    %165 = arith.mulf %164, %156 : vector<2x128xf32>
    %166 = arith.addf %148, %165 : vector<2x128xf32>
    %c8_59 = arith.constant 8 : index
    %167 = memref.load %arg5[%c8_59] : memref<9xf32, #tpu.memory_space<smem>>
    %168 = arith.mulf %167, %3 : f32
    %169 = vector.broadcast %168 : f32 to vector<2x128xf32>
    %170 = arith.mulf %169, %156 : vector<2x128xf32>
    %171 = arith.addf %153, %170 : vector<2x128xf32>
    %cst = arith.constant 0.000000e+00 : f32
    %172 = vector.broadcast %cst : f32 to vector<2x128xf32>
    %c0_60 = arith.constant 0 : index
    %c0_61 = arith.constant 0 : index
    %c0_62 = arith.constant 0 : index
    %c0_63 = arith.constant 0 : index
    %173 = vector.load %arg10[%c0_60, %c0_61, %c0_62, %c0_63] : memref<1x3x2x128xbf16, #tpu.memory_space<vmem>>, vector<1x1x2x128xbf16>
    %174 = vector.shape_cast %173 : vector<1x1x2x128xbf16> to vector<2x128xbf16>
    %175 = arith.extf %174 : vector<2x128xbf16> to vector<2x128xf32>
    %176 = arith.subf %175, %161 : vector<2x128xf32>
    %177 = math.absf %176 : vector<2x128xf32>
    %178 = arith.addf %172, %177 : vector<2x128xf32>
    %c0_64 = arith.constant 0 : index
    %c1_65 = arith.constant 1 : index
    %c0_66 = arith.constant 0 : index
    %c0_67 = arith.constant 0 : index
    %179 = vector.load %arg10[%c0_64, %c1_65, %c0_66, %c0_67] : memref<1x3x2x128xbf16, #tpu.memory_space<vmem>>, vector<1x1x2x128xbf16>
    %180 = vector.shape_cast %179 : vector<1x1x2x128xbf16> to vector<2x128xbf16>
    %181 = arith.extf %180 : vector<2x128xbf16> to vector<2x128xf32>
    %182 = arith.subf %181, %166 : vector<2x128xf32>
    %183 = math.absf %182 : vector<2x128xf32>
    %184 = arith.addf %178, %183 : vector<2x128xf32>
    %c0_68 = arith.constant 0 : index
    %c2_69 = arith.constant 2 : index
    %c0_70 = arith.constant 0 : index
    %c0_71 = arith.constant 0 : index
    %185 = vector.load %arg10[%c0_68, %c2_69, %c0_70, %c0_71] : memref<1x3x2x128xbf16, #tpu.memory_space<vmem>>, vector<1x1x2x128xbf16>
    %186 = vector.shape_cast %185 : vector<1x1x2x128xbf16> to vector<2x128xbf16>
    %187 = arith.extf %186 : vector<2x128xbf16> to vector<2x128xf32>
    %188 = arith.subf %187, %171 : vector<2x128xf32>
    %189 = math.absf %188 : vector<2x128xf32>
    %190 = arith.addf %184, %189 : vector<2x128xf32>
    %cst_72 = arith.constant dense<0.000000e+00> : vector<128xf32>
    %191 = vector.multi_reduction <add>, %190, %cst_72 [0] : vector<2x128xf32> to vector<128xf32>
    %192 = vector.shape_cast %191 : vector<128xf32> to vector<1x128xf32>
    %193 = vector.shape_cast %192 : vector<1x128xf32> to vector<1x1x1x128xf32>
    %c0_73 = arith.constant 0 : index
    %c0_74 = arith.constant 0 : index
    %c0_75 = arith.constant 0 : index
    %c0_76 = arith.constant 0 : index
    %194 = vector.load %arg11[%c0_73, %c0_74, %c0_75, %c0_76] : memref<1x1x1x128xf32, #tpu.memory_space<vmem>>, vector<1x1x1x128xf32>
    tpu.vector_store %arg11[%c0_73, %c0_74, %c0_75, %c0_76], %193 {strides = array<i32>} : memref<1x1x1x128xf32, #tpu.memory_space<vmem>>, vector<1x1x1x128xf32>,
    return
  }
  func.func @transform_0(%arg0: i32, %arg1: i32) -> i32 {
    %c0_i32 = arith.constant 0 : i32
    %c0_i32_0 = arith.constant 0 : i32
    return %c0_i32 : i32
  }
  func.func @transform_1(%arg0: i32, %arg1: i32) -> i32 {
    %c0_i32 = arith.constant 0 : i32
    %c0_i32_0 = arith.constant 0 : i32
    return %c0_i32 : i32
  }
  func.func @transform_2(%arg0: i32, %arg1: i32) -> i32 {
    %c0_i32 = arith.constant 0 : i32
    %c0_i32_0 = arith.constant 0 : i32
    return %c0_i32 : i32
  }
  func.func @transform_3(%arg0: i32, %arg1: i32) -> i32 {
    %c0_i32 = arith.constant 0 : i32
    %c0_i32_0 = arith.constant 0 : i32
    return %c0_i32 : i32
  }
  func.func @transform_4(%arg0: i32, %arg1: i32) -> i32 {
    %c0_i32 = arith.constant 0 : i32
    %c0_i32_0 = arith.constant 0 : i32
    return %c0_i32 : i32
  }
  func.func @transform_5(%arg0: i32, %arg1: i32) -> i32 {
    %c0_i32 = arith.constant 0 : i32
    %c0_i32_0 = arith.constant 0 : i32
    return %c0_i32 : i32
  }
  func.func @transform_6(%arg0: i32, %arg1: i32) -> (i32, i32, i32, i32) {
    %c0_i32 = arith.constant 0 : i32
    %c0_i32_0 = arith.constant 0 : i32
    %c0_i32_1 = arith.constant 0 : i32
    return %arg0, %c0_i32, %arg1, %c0_i32_0 : i32, i32, i32, i32
  }
  func.func @transform_7(%arg0: i32, %arg1: i32) -> (i32, i32, i32, i32) {
    %c0_i32 = arith.constant 0 : i32
    %c0_i32_0 = arith.constant 0 : i32
    %c0_i32_1 = arith.constant 0 : i32
    return %arg0, %c0_i32, %arg1, %c0_i32_0 : i32, i32, i32, i32
  }
  func.func @transform_8(%arg0: i32, %arg1: i32) -> (i32, i32, i32, i32) {
    %c0_i32 = arith.constant 0 : i32
    %c0_i32_0 = arith.constant 0 : i32
    %c0_i32_1 = arith.constant 0 : i32
    return %arg0, %c0_i32, %arg1, %c0_i32_0 : i32, i32, i32, i32
  }
  func.func @transform_9(%arg0: i32, %arg1: i32) -> (i32, i32, i32, i32) {
    %c0_i32 = arith.constant 0 : i32
    %c0_i32_0 = arith.constant 0 : i32
    %c0_i32_1 = arith.constant 0 : i32
    return %arg0, %arg1, %c0_i32, %c0_i32_0 : i32, i32, i32, i32
  }
}

</mosaic_0001>

<bundles_post_ra>
// kernel: tpu_custom_call.1
= control target key start
LH: loop header
LB: loop body
LE: loop exit
PB: predicated region body
PF: predicated region fallthrough
CT: control target
= control target key end

     0   :  { %s1577_s0 = inlined_call_operand.hbm [shape: f32[2], index: 0, kind: input, shape index: {}]   ;;  %s1578_s1 = inlined_call_operand.hbm [shape: f32[2], index: 1, kind: input, shape index: {}]   ;;  %s1579_s2 = inlined_call_operand.hbm [shape: f32[9], index: 2, kind: input, shape index: {}]   ;;  %s1580_s3 = inlined_call_operand.hbm [shape: f32[9], index: 3, kind: input, shape index: {}]   ;;  %s1581_s4 = inlined_call_operand.hbm [shape: f32[3], index: 4, kind: input, shape index: {}]   ;;  %s1582_s5 = inlined_call_operand.hbm [shape: f32[3], index: 5, kind: input, shape index: {}]   ;;  %s1583_s6 = inlined_call_operand.vmem [shape: bf16[2,3,2,128], index: 6, kind: input, shape index: {}]   ;;  %s1584_s7 = inlined_call_operand.vmem [shape: bf16[2,3,2,128], index: 7, kind: input, shape index: {}]   ;;  %s1585_s8 = inlined_call_operand.hbm [shape: bf16[2,3,2,128], index: 8, kind: input, shape index: {}]   ;;  %s1586_s9 = inlined_call_operand.hbm [shape: f32[2,1,1,128], index: 9, kind: output, shape index: {}]  }
   0x1   :  { %1593 = sst [smem:[#allocation28_spill]] %s1577_s0 }
   0x2   :  { %1594 = sst [smem:[#allocation29_spill]] %s1578_s1 }
   0x3   :  { %1595 = sst [smem:[#allocation30_spill]] %s1579_s2 }
   0x4   :  { %1596 = sst [smem:[#allocation31_spill]] %s1580_s3 }
   0x5   :  { %1597 = sst [smem:[#allocation32_spill]] %s1581_s4 }
   0x6   :  { %1598 = sst [smem:[#allocation33_spill]] %s1582_s5 }
   0x7   :  { %1599 = sst [smem:[#allocation34_spill]] %s1584_s7 }
   0x8   :  { %1600 = sst [smem:[#allocation35_spill]] %s1585_s8 }
   0x9   :  { %14 = vsyncpa [#allocation5], 0 }
   0xa   :  { %15 = vsyncpa [#allocation7], 0 }
   0xb   :  { %16 = vsyncpa [#allocation10], 0 }
   0xc   :  { %17 = vsyncpa [#allocation13], 0 }
   0xd   :  { %18 = vsyncpa [#allocation3], 0 }
   0xe   :  { %20 = vsyncpa [#allocation3 + $0x1], 0 }
   0xf   :  { %21 = vsyncpa [#allocation4], 0 }
  0x10   :  { %23 = vsyncpa [#allocation4 + $0x1], 0  ;;  %s1273_s30 = smov 0   ;;  %s1275_s10 = smov 0  }
  0x11   :  { %s1277_s11 = smov 0   ;;  %s1279_s12 = smov 0  }
  0x12   :  { %s1281_s13 = smov 0   ;;  %s1283_s14 = smov 0  }
  0x13 LB: > { %1601 = sst [smem:[#allocation22_spill]] %s1195_s10  ;;  %s845_s15 = sadd.s32 4294967295, %s1211_s14   ;;  %s1211_s14 = sphi %s1283_s14, %s29_s14   ;;  %s1207_s13 = sphi %s1281_s13, %s1628_s13   ;;  %s1203_s12 = sphi %s1279_s12, %s1627_s12   ;;  %s1199_s11 = sphi %s1277_s11, %s1626_s11   ;;  %s1195_s10 = sphi %s1275_s10, %s1625_s10   ;;  %s1191_s30 = sphi %s1273_s30, %s1624_s30  }
  0x14   : > { %1602 = sst [smem:[#allocation23_spill]] %s1199_s11  ;;  %p847_p0 = scmp.ge.s32.totalorder %s1211_s14, 1 }
  0x15   : > { %1603 = sst [smem:[#allocation24_spill]] %s1207_s13  ;;  %p1307_p1 = scmp.eq.s32.totalorder %s845_s15, 0 }
  0x16   : > { %1604 = sst [smem:[#allocation25_spill]] %s1211_s14  ;;  %p284_p2 = scmp.lt.s32.totalorder %s1211_s14, 3 }
  0x17   : > { %s1213_s18 = smov [#allocation6]   ;;  %s1607_s1 = sld [smem:[#allocation29_spill]] }
  0x18   : > { %p1313_p4 = pnand %p847_p0, %p284_p2  ;;  %s1214_s21 = smov [#allocation9]  }
  0x19   : > { %s1608_s3 = sld [smem:[#allocation31_spill]]  ;;  %s1215_s24 = smov [#allocation2]  }
  0x1a   : > { %p924_p5 = pneg %p1313_p4  ;;  %s1609_s0 = sld [smem:[#allocation28_spill]] }
  0x1b   : > { %s1216_s27 = smov [#allocation8]   ;;  %s1610_s2 = sld [smem:[#allocation30_spill]] }
  0x1c   : > { %p925_p6 = pnand %p924_p5, %p1307_p1  ;;  %s1611_s4 = sld [smem:[#allocation32_spill]] }
  0x1d   : > { %s1612_s5 = sld [smem:[#allocation33_spill]]  ;;  %s41_s25 = sadd.s32 1, %s1207_s13 }
  0x1e   : > { %930 = dma.hbm_to_smem (!%p925_p6), %s1607_s1, 16, %s1213_s18, [#allocation7]  }
  0x1f   : > { %936 = dma.hbm_to_smem (!%p925_p6), %s1608_s3, 16, %s1214_s21, [#allocation10]  }
  0x20   : > { %927 = dma.hbm_to_smem (!%p925_p6), %s1609_s0, 16, %s1215_s24, [#allocation5]  }
  0x21   : > { %933 = dma.hbm_to_smem (!%p925_p6), %s1610_s2, 16, %s1216_s27, [#allocation7]  }
  0x22   : > { %s1217_s18 = smov [#allocation11]   ;;  %s1218_s21 = smov [#allocation12]  }
  0x23   : > { %939 = dma.hbm_to_smem (!%p925_p6), %s1611_s4, 16, %s1217_s18, [#allocation10]  }
  0x24   : > { %942 = dma.hbm_to_smem (!%p925_p6), %s1612_s5, 16, %s1218_s21, [#allocation13]  }
  0x25   : > { %s846_s24 = sadd.s32 4294967294, %s1211_s14   ;;  %p43_p7 = scmp.ge.s32.totalorder %s41_s25, 2 }
  0x26   : > { %s232_s26 = sadd.s32 1, %s1199_s11  ;;  %p239_p8 = scmp.ne.s32.totalorder %s1199_s11, %s1195_s10 }
  0x27   : > { %p240_p9 = scmp.eq.s32.totalorder %s1211_s14, 0  ;;  %s1630_s25 = smov (%p43_p7, %s41_s25), 0 }
  0x28   : > { %1613 = sst [smem:[#allocation26_spill]] %s1630_s25  ;;  %p245_p11 = scmp.ne.s32.totalorder %s1195_s10, %s1191_s30 }
  0x29   : > { %p1347_p10 = por %p240_p9, %p239_p8  ;;  %s227_s28 = ssub.s32 %s1207_s13, %s1630_s25 }
  0x2a   : > { %p271_p12 = scmp.eq.s32.totalorder %s845_s15, 1  ;;  %p230_p13 = scmp.eq.s32.totalorder %s227_s28, 0 }
  0x2b   : > { %p1359_p0 = por %p1307_p1, %p245_p11  ;;  %p277_p5 = scmp.eq.s32.totalorder %s846_s24, 1 }
  0x2c   : > { %p1363_p2 = por %p271_p12, %p239_p8  ;;  %p957_p7 = scmp.lt.s32.totalorder %s1211_s14, 2 }
  0x2d   : > { %s1368_s19 = scalar_select %p230_p13, %s1199_s11, %s232_s26  }
  0x2e   : > { %p1370_p6 = por %p277_p5, %p245_p11  ;;  %s371_s21 = sand.u32 1, %s1199_s11  }
  0x2f   : > { %1617 = sst [smem:[#allocation27_spill]] %s1368_s19  ;;  %s893_s15 = smul.u32 48, %s1207_s13 }
  0x30   : > { %s892_s22 = smul.u32 3, %s371_s21  ;;  %s1619_s8 = sld [smem:[#allocation35_spill]] }
  0x31   : > { %p1382_p8 = pnand %p957_p7, %p1347_p10  ;;  %s372_s2 = scalar_lea.sflag [#allocation3], %s371_s21 }
  0x32   : > { %s375_s24 = scalar_lea.vmem [#allocation14], %s892_s22  ;;  %s1219_s4 = smov [#allocation14]  }
  0x33   : > { %s383_s26 = sshll.u32 %s375_s24, 4  ;;  %p1089_p9 = pneg %p1382_p8  ;;  %s384_s26 = int_to_ptr.vmem [resolvable:$true] %s383_s26 }
  0x34   : > { %s1100_s3 = scalar_lea.vmem %s384_s26, 48  ;;  %s1105_s5 = sshll.u32 %s1219_s4, 4  ;;  %s1106_s5 = int_to_ptr.vmem [resolvable:$false] %s1105_s5 }
  0x35   : > { %p1101_p11 = scmp.ne.s32.totalorder %s384_s26, %s1100_s3  ;;  %p1108_p5 = scmp.lt.s32.totalorder %s384_s26, %s1106_s5 }
  0x36   : > { %s382_s0 = scalar_lea.hbm %s1619_s8, %s893_s15  ;;  %s1107_s15 = scalar_lea.vmem %s1106_s5, 96 }
  0x37   : > { %p1103_p12 = pnand %p1101_p11, %p1089_p9  ;;  %p1109_p10 = scmp.lt.s32.totalorder %s1107_s15, %s1100_s3 }
  0x39   : > { %p1104_p13 = pneg %p1103_p12  ;;  %p1110_p7 = por %p1109_p10, %p1108_p5 }
  0x3b   : > { %p1111_p3 = pnand %p1110_p7, %p1104_p13 }
  0x3d   : > { %1114 = shalt.err (!%p1111_p3)
}
  0x3e   : > { %s1220_s27 = smov 16   ;;  %s1221_s22 = smov 1  }
  0x3f   : > { %946 = dma.hbm_to_vmem [thread:$0]  (!%p1382_p8), %s382_s0, 48, %s384_s26, %s372_s2, %s1220_s27, %s1220_s27, %s1221_s22  }
  0x40   : > { %395 = sbr.rel (%p1313_p4) target bundleno = 162 (0xa2), region = 56 }
  0x45   : > { %1166 = dma.done.wait (%p1307_p1), [#allocation5], 16  }
  0x46   : > { %1168 = vsyncadd (%p1307_p1), [#allocation5], 4294967280 }
  0x47   : > { %1170 = dma.done.wait (%p1307_p1), [#allocation7], 32  }
  0x48   : > { %1172 = vsyncadd (%p1307_p1), [#allocation7], 4294967264 }
  0x49   : > { %1174 = dma.done.wait (%p1307_p1), [#allocation10], 32  }
  0x4a   : > { %1176 = vsyncadd (%p1307_p1), [#allocation10], 4294967264 }
  0x4b   : > { %1178 = dma.done.wait (%p1307_p1), [#allocation13], 16  }
  0x4c   : > { %1180 = vsyncadd (%p1307_p1), [#allocation13], 4294967280  ;;  %s1409_s0 = sand.u32 1, %s1195_s10  }
  0x4d   : > { %s894_s1 = smul.u32 3, %s1409_s0  ;;  %s422_s2 = scalar_lea.sflag [#allocation3], %s1409_s0 }
  0x4f   : > { %s1413_s3 = scalar_lea.vmem [#allocation14], %s894_s1 }
  0x50   : > { %1182 = dma.done.wait (%p1359_p0), %s422_s2, 48  }
  0x51   : > { %1184 = vsyncadd (%p1359_p0), %s422_s2, 4294967248 }
  0x52   : > { %430 = sfence }
  0x53   : > { %p474_p1 = scmp.lt.s32.totalorder %s1203_s12, 1  ;;  %s1422_s5 = sld [smem:[#allocation2 + %s1203_s12]]  ;;  %v536_v6 = vld [vmem:[%s1413_s3] sm:$0x1]  ;;  %v879_v31 = vld [vmem:[%s1413_s3 + $0x1] sm:$0x1] }
  0x54   : > { %s490_s17 = sld [smem:[#allocation11]]  ;;  %v1456_v14 = vunpack.c.l.bf16 %v536_v6  ;;  %v888_v36 = vld [vmem:[%s1413_s3 + $0x2] sm:$0x1]  ;;  %v1498_v46 = vunpack.c.l.bf16 %v879_v31  ;;  %vm655_vm0 = vcmask 1041408  }
  0x55   : > { %s475_s4 = scalar_select %p474_p1, %s1203_s12, 1  ;;  %v633_v54 = vunpack.c.l.bf16 %v888_v36 }
  0x56   : > { %s491_s21 = sld [smem:[#allocation12]] }
  0x57   : > { %s895_s16 = smul.u32 3, %s475_s4  ;;  %s1425_s23 = sld [smem:[#allocation6 + %s1203_s12]] }
  0x58   : > { %s863_s28 = sld [smem:[#allocation11 + $0x1]] }
  0x59   : > { %s1621_s7 = sld [smem:[#allocation34_spill]]  ;;  %s1437_s13 = scalar_lea.vmem %s1583_s6, %s895_s16 }
  0x5a   : > { %s864_s15 = sld [smem:[#allocation12 + $0x1]]  ;;  %v519_v3 = vld [vmem:[%s1437_s13] sm:$0x1]  ;;  %v875_v17 = vld [vmem:[%s1437_s13 + $0x1] sm:$0x1] }
  0x5b   : > { %s865_s27 = sld [smem:[#allocation11 + $0x2]]  ;;  %v520_v10 = vunpack.c.l.bf16 %v519_v3  ;;  %v567_v26 = vunpack.c.l.bf16 %v875_v17  ;;  %v884_v42 = vld [vmem:[%s1437_s13 + $0x2] sm:$0x1] }
  0x5c   : > { %s866_s22 = sld [smem:[#allocation12 + $0x2]]  ;;  %s492_s1 = smul.f32 %s491_s21, %s1422_s5  ;;  %v615_v53 = vunpack.c.l.bf16 %v884_v42 }
  0x5d   : > { %s507_s2 = sld [smem:[#allocation8]] }
  0x5e   : > { %s867_s4 = sld [smem:[#allocation8 + $0x3]] }
  0x5f   : > { %s1430_s26 = scalar_lea.vmem %s1621_s7, %s895_s16  ;;  %s493_s19 = sadd.f32 %s492_s1, %s490_s17 }
  0x60   : > { %v505_v0 = vld [vmem:[%s1430_s26] sm:$0x1]  ;;  %s497_s24 = smul.f32 %s864_s15, %s1422_s5  ;;  %s868_s29 = sld [smem:[#allocation8 + $0x6]]  ;;  %v871_v11 = vld [vmem:[%s1430_s26 + $0x1] sm:$0x1] }
  0x61   : > { %v506_v1 = vunpack.c.l.bf16 %v505_v0  ;;  %s1440_s7 = sld [smem:[#allocation9]]  ;;  %v494_v7 = vstv %s493_s19  ;;  %v552_v19 = vunpack.c.l.bf16 %v871_v11  ;;  %v880_v41 = vld [vmem:[%s1430_s26 + $0x2] sm:$0x1] }
  0x62   : > { %s498_s11 = sadd.f32 %s863_s28, %s497_s24  ;;  %s502_s10 = smul.f32 %s866_s22, %s1422_s5  ;;  %v600_v52 = vunpack.c.l.bf16 %v880_v41 }
  0x63   : > { %v508_v2 = vstv %s507_s2  ;;  %s1444_s21 = sld [smem:[#allocation9 + $0x3]] }
  0x64   : > { %s1446_s14 = sadd.f32 %s865_s27, %s502_s10  ;;  %v509_v4 = vmul.f32 %v508_v2, %v506_v1  ;;  %v512_v5 = vstv %s867_s4  ;;  %v499_v12 = vstv %s498_s11 }
  0x65   : > { %s1449_s8 = sld [smem:[#allocation9 + $0x6]]  ;;  %v513_v8 = vmul.f32 %v512_v5, %v506_v1 }
  0x66   : > { %v516_v9 = vstv %s868_s29  ;;  %s1452_s25 = sld [smem:[#allocation8 + $0x1]]  ;;  %v504_v15 = vstv %s1446_s14  ;;  %v510_v16 = vadd.f32 %v509_v4, %v494_v7 }
  0x67   : > { %v517_v13 = vmul.f32 %v516_v9, %v506_v1  ;;  %s522_s10 = smul.f32 %s1440_s7, %s1422_s5  ;;  %s1458_s16 = sld [smem:[#allocation8 + $0x4]]  ;;  %v514_v20 = vadd.f32 %v513_v8, %v499_v12 }
  0x68   : > { %s538_s19 = smul.f32 %s1440_s7, %s1425_s23  ;;  %s1463_s17 = sld [smem:[#allocation8 + $0x7]] }
  0x69   : > { %v523_v18 = vstv %s522_s10  ;;  %s527_s28 = smul.f32 %s1444_s21, %s1422_s5  ;;  %s1468_s11 = sld [smem:[#allocation9 + $0x1]]  ;;  %v518_v23 = vadd.f32 %v517_v13, %v504_v15 }
  0x6a   : > { %v524_v21 = vmul.f32 %v523_v18, %v520_v10  ;;  %v539_v22 = vstv %s538_s19  ;;  %s542_s14 = smul.f32 %s1444_s21, %s1425_s23  ;;  %s1472_s15 = sld [smem:[#allocation9 + $0x4]] }
  0x6b   : > { %v528_v24 = vstv %s527_s28  ;;  %s532_s7 = smul.f32 %s1449_s8, %s1422_s5  ;;  %v540_v25 = vmul.f32 %v539_v22, %v1456_v14  ;;  %s1477_s27 = sld [smem:[#allocation9 + $0x7]] }
  0x6c   : > { %v525_v27 = vadd.f32 %v524_v21, %v510_v16  ;;  %v529_v28 = vmul.f32 %v528_v24, %v520_v10  ;;  %v543_v29 = vstv %s542_s14  ;;  %s546_s22 = smul.f32 %s1449_s8, %s1425_s23  ;;  %v554_v30 = vstv %s1452_s25  ;;  %s1483_s1 = sld [smem:[#allocation8 + $0x2]] }
  0x6d   : > { %v533_v32 = vstv %s532_s7  ;;  %v544_v33 = vmul.f32 %v543_v29, %v1456_v14  ;;  %v555_v34 = vmul.f32 %v554_v30, %v552_v19  ;;  %v558_v35 = vstv %s1458_s16  ;;  %s1487_s2 = sld [smem:[#allocation8 + $0x5]] }
  0x6e   : > { %v530_v37 = vadd.f32 %v529_v28, %v514_v20  ;;  %v534_v38 = vmul.f32 %v533_v32, %v520_v10  ;;  %v541_v39 = vadd.f32 %v540_v25, %v525_v27  ;;  %v547_v40 = vstv %s546_s22  ;;  %s1491_s4 = sld [smem:[#allocation8 + $0x8]] }
  0x6f   : > { %v548_v43 = vmul.f32 %v547_v40, %v1456_v14  ;;  %v559_v44 = vmul.f32 %v558_v35, %v552_v19  ;;  %v562_v45 = vstv %s1463_s17  ;;  %s569_s24 = smul.f32 %s1468_s11, %s1422_s5  ;;  %s1500_s3 = sld [smem:[#allocation9 + $0x2]] }
  0x70   : > { %v535_v47 = vadd.f32 %v534_v38, %v518_v23  ;;  %v545_v48 = vadd.f32 %v544_v33, %v530_v37  ;;  %v556_v49 = vadd.f32 %v555_v34, %v541_v39  ;;  %v563_v50 = vmul.f32 %v562_v45, %v552_v19  ;;  %s574_s26 = smul.f32 %s1472_s15, %s1422_s5  ;;  %s1504_s13 = sld [smem:[#allocation9 + $0x5]] }
  0x71   : > { %v570_v51 = vstv %s569_s24  ;;  %s579_s29 = smul.f32 %s1477_s27, %s1422_s5  ;;  %s1508_s21 = sld [smem:[#allocation9 + $0x8]] }
  0x72   : > { %v549_v55 = vadd.f32 %v548_v43, %v535_v47  ;;  %v560_v56 = vadd.f32 %v559_v44, %v545_v48  ;;  %v571_v57 = vmul.f32 %v570_v51, %v567_v26  ;;  %v575_v58 = vstv %s574_s26  ;;  %s586_s8 = smul.f32 %s1468_s11, %s1425_s23 }
  0x73   : > { %v576_v59 = vmul.f32 %v575_v58, %v567_v26  ;;  %v580_v60 = vstv %s579_s29  ;;  %s590_s25 = smul.f32 %s1472_s15, %s1425_s23  ;;  %v602_v61 = vstv %s1483_s1  ;;  %v606_v62 = vstv %s1487_s2  ;;  %s665_s1 = scalar_lea.sflag [#allocation4], %s1409_s0 }
  0x74   : > { %v564_v63 = vadd.f32 %v563_v50, %v549_v55  ;;  %v572_v0 = vadd.f32 %v571_v57, %v556_v49  ;;  %v581_v1 = vmul.f32 %v580_v60, %v567_v26  ;;  %v587_v2 = vstv %s586_s8  ;;  %s594_s10 = smul.f32 %s1477_s27, %s1425_s23 }
  0x75   : > { %v577_v3 = vadd.f32 %v576_v59, %v560_v56  ;;  %v588_v4 = vmul.f32 %v587_v2, %v1498_v46  ;;  %v591_v5 = vstv %s590_s25  ;;  %v603_v6 = vmul.f32 %v602_v61, %v600_v52  ;;  %s617_s16 = smul.f32 %s1500_s3, %s1422_s5 }
  0x76   : > { %v582_v7 = vadd.f32 %v581_v1, %v564_v63  ;;  %v592_v8 = vmul.f32 %v591_v5, %v1498_v46  ;;  %v595_v9 = vstv %s594_s10  ;;  %v607_v10 = vmul.f32 %v606_v62, %v600_v52  ;;  %s622_s19 = smul.f32 %s1504_s13, %s1422_s5 }
  0x77   : > { %v589_v11 = vadd.f32 %v588_v4, %v572_v0  ;;  %v596_v12 = vmul.f32 %v595_v9, %v1498_v46  ;;  %v610_v13 = vstv %s1491_s4  ;;  %v618_v15 = vstv %s617_s16  ;;  %s627_s17 = smul.f32 %s1508_s21, %s1422_s5  ;;  %s889_s5 = sshll.u32 %s1203_s12, 4 }
  0x78   : > { %v593_v16 = vadd.f32 %v592_v8, %v577_v3  ;;  %v611_v17 = vmul.f32 %v610_v13, %v600_v52  ;;  %v619_v18 = vmul.f32 %v618_v15, %v615_v53  ;;  %v623_v19 = vstv %s622_s19  ;;  %s634_s28 = smul.f32 %s1500_s3, %s1425_s23  ;;  %s676_s22 = scalar_lea.hbm %s1586_s9, %s889_s5 }
  0x79   : > { %v597_v20 = vadd.f32 %v596_v12, %v582_v7  ;;  %v604_v21 = vadd.f32 %v603_v6, %v589_v11  ;;  %v624_v22 = vmul.f32 %v623_v19, %v615_v53  ;;  %v628_v23 = vstv %s627_s17  ;;  %s638_s11 = smul.f32 %s1504_s13, %s1425_s23  ;;  %s1222_s4 = smov [#allocation15]  }
  0x7a   : > { %v608_v24 = vadd.f32 %v607_v10, %v593_v16  ;;  %v629_v25 = vmul.f32 %v628_v23, %v615_v53  ;;  %v635_v26 = vstv %s634_s28  ;;  %s642_s14 = smul.f32 %s1508_s21, %s1425_s23  ;;  %s473_s23 = scalar_lea.vmem [#allocation15], %s1409_s0 }
  0x7b   : > { %v612_v27 = vadd.f32 %v611_v17, %v597_v20  ;;  %v620_v28 = vadd.f32 %v619_v18, %v604_v21  ;;  %v636_v29 = vmul.f32 %v635_v26, %v633_v54  ;;  %v639_v30 = vstv %s638_s11  ;;  %s678_s15 = sshll.u32 %s473_s23, 4  ;;  %s1119_s24 = sshll.u32 %s1222_s4, 4  ;;  %s679_s15 = int_to_ptr.vmem [resolvable:$true] %s678_s15  ;;  %s1120_s24 = int_to_ptr.vmem [resolvable:$false] %s1119_s24 }
  0x7c   : > { %v625_v31 = vadd.f32 %v624_v22, %v608_v24  ;;  %v640_v32 = vmul.f32 %v639_v30, %v633_v54  ;;  %v643_v33 = vstv %s642_s14  ;;  %s1115_s2 = scalar_lea.vmem %s679_s15, 16  ;;  %s1121_s12 = scalar_lea.vmem %s1120_s24, 32 }
  0x7d   : > { %v630_v34 = vadd.f32 %v629_v25, %v612_v27  ;;  %v637_v35 = vadd.f32 %v636_v29, %v620_v28  ;;  %v644_v36 = vmul.f32 %v643_v33, %v633_v54  ;;  %p1116_p3 = scmp.ne.s32.totalorder %s679_s15, %s1115_s2  ;;  %p1122_p8 = scmp.lt.s32.totalorder %s679_s15, %s1120_s24 }
  0x7e   : > { %v641_v37 = vadd.f32 %v640_v32, %v625_v31  ;;  %p1123_p9 = scmp.lt.s32.totalorder %s1121_s12, %s1115_s2 }
  0x7f   : > { %v645_v38 = vadd.f32 %v644_v36, %v630_v34  ;;  %v646_v39 = vsub.f32 %v1456_v14, %v637_v35  ;;  %p1117_p4 = pnand %p1116_p3, %p1363_p2 }
  0x80   : > { %v649_v40 = vsub.f32 %v1498_v46, %v641_v37  ;;  %p1124_p11 = por %p1123_p9, %p1122_p8 }
  0x81   : > { %v647_v41 = vand.u32 2147483647, %v646_v39  ;;  %v652_v42 = vsub.f32 %v633_v54, %v645_v38  ;;  %p1118_p0 = pneg %p1117_p4 }
  0x82   : > { %v650_v43 = vand.u32 2147483647, %v649_v40 }
  0x83   : > { %v653_v44 = vand.u32 2147483647, %v652_v42  ;;  %p1125_p12 = pnand %p1124_p11, %p1118_p0 }
  0x84   : > { %v651_v45 = vadd.f32 %v650_v43, %v647_v41 }
  0x86   : > { %v654_v47 = vadd.f32 %v653_v44, %v651_v45 }
  0x88   : > { %v656_v48 = vsel %vm655_vm0, %v654_v47, 0.0 }
  0x89   : > { %v657_v49 = vrot.slane %v656_v48, 4 }
  0x8b   : > { %v658_v50 = vadd.f32 %v657_v49, %v656_v48 }
  0x8d   : > { %v659_v51 = vrot.slane %v658_v50, 2 }
  0x8f   : > { %v660_v52 = vadd.f32 %v659_v51, %v658_v50 }
  0x91   : > { %v661_v14 = vrot.slane %v660_v52, 1 }
  0x93   : > { %v662_v53 = vadd.f32 %v661_v14, %v660_v52 }
  0x95   : > { %663 = vst [vmem:[%s473_s23] sm:$0x1] %v662_v53 }
  0x96   : > { %1128 = shalt.err (!%p1125_p12)
}
  0x97   : > { %s1129_s3 = scalar_lea.hbm %s676_s22, 16  ;;  %s1133_s13 = scalar_lea.hbm %s1586_s9, 32 }
  0x98   : > { %p1130_p13 = scmp.ne.s32.totalorder %s676_s22, %s1129_s3  ;;  %p1134_p7 = scmp.lt.s32.totalorder %s676_s22, %s1586_s9 }
  0x99   : > { %p1135_p1 = scmp.lt.s32.totalorder %s1133_s13, %s1129_s3 }
  0x9a   : > { %p1131_p5 = pnand %p1130_p13, %p1363_p2 }
  0x9b   : > { %p1136_p3 = por %p1135_p1, %p1134_p7 }
  0x9c   : > { %p1132_p10 = pneg %p1131_p5 }
  0x9e   : > { %p1137_p4 = pnand %p1136_p3, %p1132_p10 }
  0xa0   : > { %1140 = shalt.err (!%p1137_p4)
}
  0xa1   : > { %922 = dma.vmem_to_hbm [thread:$0]  (%p1363_p2), %s679_s15, 16, %s676_s22, %s665_s1  }
  0xa2 PF: > { %s1622_s8 = sld [smem:[#allocation25_spill]]  ;;  %s690_s25 = sand.u32 1, %s1191_s30  }
  0xa3   : > { %s691_s10 = scalar_lea.sflag [#allocation4], %s690_s25 }
  0xa8   : > { %p1623_p0 = scmp.ge.s32.totalorder %s1622_s8, 2 }
  0xaa   : > { %p948_p8 = pnand %p1623_p0, %p1370_p6 }
  0xac   : > { %p949_p9 = pneg %p948_p8 }
  0xae   : > { %1186 = dma.done.wait (%p949_p9), %s691_s10, 16  }
  0xaf   : > { %1188 = vsyncadd (%p949_p9), %s691_s10, 4294967280  ;;  %s29_s14 = sadd.s32 1, %s1622_s8   ;;  %s1624_s30 = sld [smem:[#allocation22_spill]] }
  0xb0   : > { %p26_p11 = scmp.ge.s32.totalorder %s29_s14, 4   ;;  %s1625_s10 = sld [smem:[#allocation23_spill]] }
  0xb1   : > { %s1626_s11 = sld [smem:[#allocation27_spill]] }
  0xb2   : > { %s1627_s12 = sld [smem:[#allocation24_spill]]  ;;  %28 = sbr.rel (!%p26_p11) target bundleno = 19 (0x13), region = 138 }
  0xb3   : > { %s1628_s13 = sld [smem:[#allocation26_spill]] }
  0xb7   :  { %695 = vsyncpa [#allocation3], 1 }
  0xb8   :  { %697 = vsyncpa [#allocation3 + $0x1], 1 }
  0xb9   :  { %698 = vsyncpa [#allocation4], 1 }
  0xba   :  { %700 = vsyncpa [#allocation4 + $0x1], 1 }
  0xbb   :  { %701 = vsyncpa [#allocation5], 1 }
  0xbc   :  { %703 = vsyncpa [#allocation5 + $0x1], 1 }
  0xbd   :  { %704 = vsyncpa [#allocation7], 1 }
  0xbe   :  { %705 = vsyncpa [#allocation10], 1 }
  0xbf   :  { %706 = vsyncpa [#allocation13], 1 }

</bundles_post_ra>
